<compile_context>
chip_gen: v5e
topology: v5e:2x2
jax: 0.10.0
libtpu: 0.0.40
codegen_flags: <defaults>
</compile_context>

<pallas_src>
import functools

import jax
import jax.numpy as jnp
from jax import lax
from jax.experimental import pallas as pl
from jax.experimental.pallas import tpu as pltpu

SMOOTH = 1e-15
LANES = 128
SUBLANE_ALIGN = 32                              # covers int8 / bf16 sublane packing
NUM_SLABS = 2                                   # leading "parallel" axis (both TCs on v7x)
SLAB_ALIGN = NUM_SLABS * SUBLANE_ALIGN * LANES  # 8192 elements


def _round_up(x, m):
    return ((x + m - 1) // m) * m


def _tile_config():
    """Generation-aware (tile_rows, vmem_limit_bytes)."""
    try:
        kind = jax.devices()[0].device_kind.lower()
    except Exception:
        kind = ""
    if "v7" in kind or "7x" in kind:
        # 3.2 TB/s HBM: 4 MiB f32 blocks keep the ~0.35 us/step overhead ~10%.
        # 2 inputs x 2 buffers x 4 MiB = 16 MiB (+ temporaries) -> 48 MiB limit.
        return 8192, 48 * 1024 * 1024
    # v5e / v6e: 2 MiB f32 blocks already sit near the HBM roofline.
    return 4096, 32 * 1024 * 1024


def _dice_kernel(yt_ref, yp_ref, inter_ref, total_ref, *,
                 tile_rows, acc_rows, valid_rows_last, is_ragged):
    step = pl.program_id(1)

    # Zero this slab's output-resident accumulators on its first tile.
    @pl.when(step == 0)
    def _():
        inter_ref[...] = jnp.zeros_like(inter_ref)
        total_ref[...] = jnp.zeros_like(total_ref)

    def accumulate(valid_rows):
        # Widen to f32 in VMEM (HBM stream stays at native dtype width).
        yt = yt_ref[0].astype(jnp.float32)          # (tile_rows, LANES)
        yp = yp_ref[0].astype(jnp.float32)
        prod = yt * yp                              # intersection term
        both = yt + yp                              # denominator needs only the sum
        if valid_rows is not None:
            # Only the (single) ragged tile pays for iota/compare/select; stale
            # VMEM rows (possibly NaN/Inf) are discarded by the select.
            row_ids = lax.broadcasted_iota(jnp.int32, (tile_rows, LANES), 0)
            keep = row_ids < valid_rows
            prod = jnp.where(keep, prod, 0.0)
            both = jnp.where(keep, both, 0.0)
        # vreg-shaped partial sums: acc_rows//8 independent add chains per
        # accumulator (VPU-only); the cross-lane reduce happens in the wrapper.
        shape3 = (tile_rows // acc_rows, acc_rows, LANES)
        inter_ref[...] += jnp.sum(prod.reshape(shape3), axis=0)[None]
        total_ref[...] += jnp.sum(both.reshape(shape3), axis=0)[None]

    if is_ragged:
        # Static trace-time condition: aligned inputs emit no mask code at all;
        # ragged inputs run the mask only on the last grid step.
        last = pl.num_programs(1) - 1

        @pl.when(step != last)
        def _():
            accumulate(None)

        @pl.when(step == last)
        def _():
            accumulate(valid_rows_last)
    else:
        accumulate(None)


def dice_coef(y_true, y_pred, smooth=SMOOTH, tile_rows=None):
    assert y_true.shape == y_pred.shape, "y_true / y_pred shapes must match"
    yt = jnp.ravel(y_true)
    yp = jnp.ravel(y_pred)
    # Binary masks stay 1 B/elem in HBM; f32 widening happens in-kernel.
    # (int8 astype is a 1B->1B pass; a PRED bitcast view is not portable.)
    if yt.dtype == jnp.bool_:
        yt = yt.astype(jnp.int8)
    if yp.dtype == jnp.bool_:
        yp = yp.astype(jnp.int8)

    n = yt.shape[0]
    n_main = (n // SLAB_ALIGN) * SLAB_ALIGN

    # <= SLAB_ALIGN-1 element tail (and tiny inputs) reduced with plain jnp:
    # no full-array jnp.pad copy through HBM.
    yt_tail = yt[n_main:].astype(jnp.float32)
    yp_tail = yp[n_main:].astype(jnp.float32)
    inter = jnp.sum(yt_tail * yp_tail)
    total = jnp.sum(yt_tail) + jnp.sum(yp_tail)

    if n_main > 0:
        rows_per_slab = n_main // (NUM_SLABS * LANES)   # multiple of 32
        yt3 = yt[:n_main].reshape(NUM_SLABS, rows_per_slab, LANES)
        yp3 = yp[:n_main].reshape(NUM_SLABS, rows_per_slab, LANES)

        default_tr, vmem_limit = _tile_config()
        if tile_rows is None:
            tr = default_tr
        else:
            tr = _round_up(max(int(tile_rows), SUBLANE_ALIGN), SUBLANE_ALIGN)
        tr = min(tr, rows_per_slab)                      # never exceed the slab
        acc_rows = 64 if tr % 64 == 0 else 32            # 8 or 4 vregs / accumulator
        num_tiles = pl.cdiv(rows_per_slab, tr)
        is_ragged = (rows_per_slab % tr) != 0
        valid_rows_last = rows_per_slab - (num_tiles - 1) * tr

        kernel = functools.partial(
            _dice_kernel,
            tile_rows=tr,
            acc_rows=acc_rows,
            valid_rows_last=valid_rows_last,
            is_ragged=is_ragged,
        )

        acc_shape = jax.ShapeDtypeStruct((NUM_SLABS, acc_rows, LANES), jnp.float32)
        inter_p, total_p = pl.pallas_call(
            kernel,
            out_shape=(acc_shape, acc_shape),
            grid_spec=pltpu.PrefetchScalarGridSpec(
                num_scalar_prefetch=0,
                grid=(NUM_SLABS, num_tiles),
                in_specs=[
                    pl.BlockSpec((1, tr, LANES), lambda s, i: (s, i, 0)),
                    pl.BlockSpec((1, tr, LANES), lambda s, i: (s, i, 0)),
                ],
                out_specs=[
                    pl.BlockSpec((1, acc_rows, LANES), lambda s, i: (s, 0, 0)),
                    pl.BlockSpec((1, acc_rows, LANES), lambda s, i: (s, 0, 0)),
                ],
            ),
            compiler_params=pltpu.CompilerParams(
                dimension_semantics=("parallel", "arbitrary"),
                vmem_limit_bytes=vmem_limit,
            ),
        )(yt3, yp3)
        inter = inter + jnp.sum(inter_p)
        total = total + jnp.sum(total_p)

    return (2.0 * inter + smooth) / (total + smooth)


def _ref_dice(y_true, y_pred, smooth=SMOOTH):
    yt = jnp.ravel(y_true).astype(jnp.float32)
    yp = jnp.ravel(y_pred).astype(jnp.float32)
    return (2.0 * jnp.sum(yt * yp) + smooth) / (jnp.sum(yt) + jnp.sum(yp) + smooth)


if __name__ == "__main__":
    key = jax.random.PRNGKey(0)
    k1, k2, k3, k4, k5, k6 = jax.random.split(key, 6)

    # 1) Segmentation-style pair: bool ground-truth mask (streams as int8),
    #    f32 predictions.  24576 elems -> main body only, one tile per slab.
    shape1 = (2, 1, 96, 128)
    y_true1 = jax.random.uniform(k1, shape1) > 0.5
    y_pred1 = jax.random.uniform(k2, shape1, dtype=jnp.float32)
    res1 = dice_coef(y_true1, y_pred1)
    jax.block_until_ready(res1)
    ref1 = _ref_dice(y_true1, y_pred1)
    assert jnp.allclose(res1, ref1, rtol=1e-5, atol=1e-6), (res1, ref1)

    # 2) Multi-tile + ragged last tile per slab + wrapper-side tail + native
    #    bf16 predictions (small tile_rows to exercise the grid accumulator).
    shape2 = (3, 1, 100, 99)          # 29700 elems = 24576 main + 5124 tail
    y_true2 = (jax.random.uniform(k3, shape2) > 0.5).astype(jnp.float32)
    y_pred2 = jax.random.uniform(k4, shape2).astype(jnp.bfloat16)
    res2 = dice_coef(y_true2, y_pred2, tile_rows=64)
    jax.block_until_ready(res2)
    ref2 = _ref_dice(y_true2, y_pred2)
    assert jnp.allclose(res2, ref2, rtol=1e-4, atol=1e-5), (res2, ref2)

    # 3) Tiny input: handled entirely by the wrapper tail path (no kernel).
    shape3 = (2, 4, 16, 16)
    y_true3 = (jax.random.uniform(k5, shape3) > 0.5).astype(jnp.float32)
    y_pred3 = jax.random.uniform(k6, shape3, dtype=jnp.float32)
    res3 = dice_coef(y_true3, y_pred3)
    jax.block_until_ready(res3)
    ref3 = _ref_dice(y_true3, y_pred3)
    assert jnp.allclose(res3, ref3, rtol=1e-6, atol=1e-6), (res3, ref3)

    print("KERNEL_OK")
</pallas_src>

<mosaic_0001>
module attributes {stable_mosaic.version = 11 : i64} {
  func.func @_dice_kernel(%arg0: i32, %arg1: i32, %arg2: memref<1x96x128xi8, #tpu.memory_space<vmem>>, %arg3: memref<1x96x128xf32, #tpu.memory_space<vmem>>, %arg4: memref<1x32x128xf32, #tpu.memory_space<vmem>>, %arg5: memref<1x32x128xf32, #tpu.memory_space<vmem>>) attributes {dimension_semantics = [#tpu.dimension_semantics<parallel>, #tpu.dimension_semantics<arbitrary>], iteration_bounds = array<i64: 2, 1>, scalar_prefetch = 0 : i64, scratch_operands = 0 : i64, tpu.core_type = #tpu.core_type<tc>, window_params = [{transform_indices = @transform_0, window_bounds = array<i64: 1, 96, 128>}, {transform_indices = @transform_1, window_bounds = array<i64: 1, 96, 128>}, {transform_indices = @transform_2, window_bounds = array<i64: 1, 32, 128>}, {transform_indices = @transform_3, window_bounds = array<i64: 1, 32, 128>}]} {
    %c0_i32 = arith.constant 0 : i32
    %0 = arith.cmpi eq, %arg1, %c0_i32 : i32
    %1 = arith.extui %0 : i1 to i32
    %c0_i32_0 = arith.constant 0 : i32
    %2 = arith.cmpi ne, %1, %c0_i32_0 : i32
    scf.if %2 {
      %cst_19 = arith.constant 0.000000e+00 : f32
      %22 = vector.broadcast %cst_19 : f32 to vector<1x32x128xf32>
      %c0_20 = arith.constant 0 : index
      %c0_21 = arith.constant 0 : index
      %c0_22 = arith.constant 0 : index
      %23 = vector.load %arg4[%c0_20, %c0_21, %c0_22] : memref<1x32x128xf32, #tpu.memory_space<vmem>>, vector<1x32x128xf32>
      tpu.vector_store %arg4[%c0_20, %c0_21, %c0_22], %22 {strides = array<i32>} : memref<1x32x128xf32, #tpu.memory_space<vmem>>, vector<1x32x128xf32>,
      %cst_23 = arith.constant 0.000000e+00 : f32
      %24 = vector.broadcast %cst_23 : f32 to vector<1x32x128xf32>
      %c0_24 = arith.constant 0 : index
      %c0_25 = arith.constant 0 : index
      %c0_26 = arith.constant 0 : index
      %25 = vector.load %arg5[%c0_24, %c0_25, %c0_26] : memref<1x32x128xf32, #tpu.memory_space<vmem>>, vector<1x32x128xf32>
      tpu.vector_store %arg5[%c0_24, %c0_25, %c0_26], %24 {strides = array<i32>} : memref<1x32x128xf32, #tpu.memory_space<vmem>>, vector<1x32x128xf32>,
    } else {
    }
    %c0 = arith.constant 0 : index
    %c0_1 = arith.constant 0 : index
    %c0_2 = arith.constant 0 : index
    %3 = vector.load %arg2[%c0, %c0_1, %c0_2] : memref<1x96x128xi8, #tpu.memory_space<vmem>>, vector<1x96x128xi8>
    %4 = vector.shape_cast %3 : vector<1x96x128xi8> to vector<96x128xi8>
    %5 = arith.sitofp %4 : vector<96x128xi8> to vector<96x128xf32>
    %c0_3 = arith.constant 0 : index
    %c0_4 = arith.constant 0 : index
    %c0_5 = arith.constant 0 : index
    %6 = vector.load %arg3[%c0_3, %c0_4, %c0_5] : memref<1x96x128xf32, #tpu.memory_space<vmem>>, vector<1x96x128xf32>
    %7 = vector.shape_cast %6 : vector<1x96x128xf32> to vector<96x128xf32>
    %8 = arith.mulf %5, %7 : vector<96x128xf32>
    %9 = arith.addf %5, %7 : vector<96x128xf32>
    %c0_6 = arith.constant 0 : index
    %c0_7 = arith.constant 0 : index
    %c0_8 = arith.constant 0 : index
    %10 = vector.load %arg4[%c0_6, %c0_7, %c0_8] : memref<1x32x128xf32, #tpu.memory_space<vmem>>, vector<1x32x128xf32>
    %11 = vector.shape_cast %8 : vector<96x128xf32> to vector<3x32x128xf32>
    %cst = arith.constant dense<0.000000e+00> : vector<32x128xf32>
    %12 = vector.multi_reduction <add>, %11, %cst [0] : vector<3x32x128xf32> to vector<32x128xf32>
    %13 = vector.shape_cast %12 : vector<32x128xf32> to vector<1x32x128xf32>
    %14 = arith.addf %10, %13 : vector<1x32x128xf32>
    %c0_9 = arith.constant 0 : index
    %c0_10 = arith.constant 0 : index
    %c0_11 = arith.constant 0 : index
    %15 = vector.load %arg4[%c0_9, %c0_10, %c0_11] : memref<1x32x128xf32, #tpu.memory_space<vmem>>, vector<1x32x128xf32>
    tpu.vector_store %arg4[%c0_9, %c0_10, %c0_11], %14 {strides = array<i32>} : memref<1x32x128xf32, #tpu.memory_space<vmem>>, vector<1x32x128xf32>,
    %c0_12 = arith.constant 0 : index
    %c0_13 = arith.constant 0 : index
    %c0_14 = arith.constant 0 : index
    %16 = vector.load %arg5[%c0_12, %c0_13, %c0_14] : memref<1x32x128xf32, #tpu.memory_space<vmem>>, vector<1x32x128xf32>
    %17 = vector.shape_cast %9 : vector<96x128xf32> to vector<3x32x128xf32>
    %cst_15 = arith.constant dense<0.000000e+00> : vector<32x128xf32>
    %18 = vector.multi_reduction <add>, %17, %cst_15 [0] : vector<3x32x128xf32> to vector<32x128xf32>
    %19 = vector.shape_cast %18 : vector<32x128xf32> to vector<1x32x128xf32>
    %20 = arith.addf %16, %19 : vector<1x32x128xf32>
    %c0_16 = arith.constant 0 : index
    %c0_17 = arith.constant 0 : index
    %c0_18 = arith.constant 0 : index
    %21 = vector.load %arg5[%c0_16, %c0_17, %c0_18] : memref<1x32x128xf32, #tpu.memory_space<vmem>>, vector<1x32x128xf32>
    tpu.vector_store %arg5[%c0_16, %c0_17, %c0_18], %20 {strides = array<i32>} : memref<1x32x128xf32, #tpu.memory_space<vmem>>, vector<1x32x128xf32>,
    return
  }
  func.func @transform_0(%arg0: i32, %arg1: i32) -> (i32, i32, i32) {
    %c0_i32 = arith.constant 0 : i32
    %c0_i32_0 = arith.constant 0 : i32
    return %arg0, %arg1, %c0_i32 : i32, i32, i32
  }
  func.func @transform_1(%arg0: i32, %arg1: i32) -> (i32, i32, i32) {
    %c0_i32 = arith.constant 0 : i32
    %c0_i32_0 = arith.constant 0 : i32
    return %arg0, %arg1, %c0_i32 : i32, i32, i32
  }
  func.func @transform_2(%arg0: i32, %arg1: i32) -> (i32, i32, i32) {
    %c0_i32 = arith.constant 0 : i32
    %c0_i32_0 = arith.constant 0 : i32
    %c0_i32_1 = arith.constant 0 : i32
    return %arg0, %c0_i32, %c0_i32_0 : i32, i32, i32
  }
  func.func @transform_3(%arg0: i32, %arg1: i32) -> (i32, i32, i32) {
    %c0_i32 = arith.constant 0 : i32
    %c0_i32_0 = arith.constant 0 : i32
    %c0_i32_1 = arith.constant 0 : i32
    return %arg0, %c0_i32, %c0_i32_0 : i32, i32, i32
  }
}

</mosaic_0001>

<bundles_post_ra>
// kernel: tpu_custom_call.1
= control target key start
LH: loop header
LB: loop body
LE: loop exit
PB: predicated region body
PF: predicated region fallthrough
CT: control target
= control target key end

     0   :  { %s1055_s0 = inlined_call_operand.hbm [shape: s8[2,96,128], index: 0, kind: input, shape index: {}]   ;;  %s1056_s1 = inlined_call_operand.hbm [shape: f32[2,96,128], index: 1, kind: input, shape index: {}]   ;;  %s1057_s2 = inlined_call_operand.hbm [shape: f32[2,32,128], index: 2, kind: output, shape index: {0}]   ;;  %s1058_s3 = inlined_call_operand.hbm [shape: f32[2,32,128], index: 3, kind: output, shape index: {1}]  }
   0x1   :  { %1059 = sst [smem:[#allocation14_spill]] %s1055_s0 }
   0x2   :  { %9 = vsyncpa [#allocation3], 0 }
   0x3   :  { %11 = vsyncpa [#allocation3 + $0x1], 0 }
   0x4   :  { %12 = vsyncpa [#allocation6], 0 }
   0x5   :  { %14 = vsyncpa [#allocation6 + $0x1], 0 }
   0x6   :  { %15 = vsyncpa [#allocation4], 0 }
   0x7   :  { %17 = vsyncpa [#allocation4 + $0x1], 0 }
   0x8   :  { %18 = vsyncpa [#allocation9], 0 }
   0x9   :  { %20 = vsyncpa [#allocation9 + $0x1], 0  ;;  %s868_s12 = smov 0   ;;  %s870_s13 = smov 0  }
   0xa   :  { %s872_s14 = smov 0   ;;  %s874_s15 = smov 0  }
   0xb   :  { %s876_s16 = smov 0   ;;  %s878_s17 = smov 0  }
   0xc LB: > { %s562_s18 = sadd.s32 4294967295, %s842_s17   ;;  %s563_s19 = sadd.s32 4294967294, %s842_s17   ;;  %s842_s17 = sphi %s878_s17, %s26_s17   ;;  %s838_s16 = sphi %s876_s16, %s1070_s16   ;;  %s834_s15 = sphi %s874_s15, %s1069_s15   ;;  %s830_s14 = sphi %s872_s14, %s1068_s14   ;;  %s826_s13 = sphi %s870_s13, %s1067_s13   ;;  %s822_s12 = sphi %s868_s12, %s1066_s12  }
   0xd   : > { %s38_s20 = sadd.s32 1, %s838_s16  ;;  %s47_s21 = sadd.s32 1, %s830_s14 }
   0xe   : > { %p40_p0 = scmp.ge.s32.totalorder %s38_s20, 2  ;;  %p54_p1 = scmp.ne.s32.totalorder %s830_s14, %s826_s13 }
   0xf   : > { %p55_p2 = scmp.eq.s32.totalorder %s842_s17, 0  ;;  %p60_p3 = scmp.ne.s32.totalorder %s826_s13, %s822_s12 }
  0x10   : > { %s1072_s20 = smov (%p40_p0, %s38_s20), 0  ;;  %p61_p5 = scmp.eq.s32.totalorder %s562_s18, 0 }
  0x11   : > { %p909_p4 = por %p55_p2, %p54_p1  ;;  %s42_s23 = ssub.s32 %s838_s16, %s1072_s20 }
  0x12   : > { %p112_p6 = scmp.eq.s32.totalorder %s562_s18, 1  ;;  %p45_p7 = scmp.eq.s32.totalorder %s42_s23, 0 }
  0x13   : > { %p915_p8 = por %p61_p5, %p60_p3  ;;  %p118_p10 = scmp.eq.s32.totalorder %s563_s19, 1 }
  0x14   : > { %p919_p9 = por %p112_p6, %p54_p1  ;;  %p565_p12 = scmp.ge.s32.totalorder %s842_s17, 2 }
  0x15   : > { %s924_s26 = scalar_select %p45_p7, %s830_s14, %s47_s21  }
  0x16   : > { %p926_p11 = por %p118_p10, %p60_p3  ;;  %p609_p13 = scmp.lt.s32.totalorder %s842_s17, 2 }
  0x17   : > { %s933_s28 = sand.u32 1, %s830_s14   ;;  %s582_s30 = smul.u32 24, %s838_s16 }
  0x18   : > { %s581_s29 = smul.u32 24, %s933_s28  ;;  %p939_p0 = pnand %p609_p13, %p909_p4 }
  0x19   : > { %s1065_s0 = sld [smem:[#allocation14_spill]]  ;;  %p568_p1 = scmp.ge.s32.totalorder %s842_s17, 1 }
  0x1a   : > { %s168_s8 = scalar_lea.vmem [#allocation2], %s581_s29  ;;  %s165_s11 = scalar_lea.sflag [#allocation3], %s933_s28 }
  0x1b   : > { %s178_s9 = sshll.u32 %s168_s8, 4  ;;  %s844_s18 = smov 128   ;;  %s179_s9 = int_to_ptr.vmem [resolvable:$true] %s178_s9 }
  0x1c   : > { %s845_s19 = smov 8   ;;  %p210_p2 = scmp.lt.s32.totalorder %s842_s17, 3 }
  0x1d   : > { %s583_s21 = smul.u32 96, %s933_s28  ;;  %s189_s8 = scalar_lea.sflag [#allocation6], %s933_s28 }
  0x1e   : > { %p211_p3 = pnand %p568_p1, %p210_p2  ;;  %s584_s22 = smul.u32 96, %s838_s16 }
  0x1f   : > { %s175_s7 = scalar_lea.hbm %s1065_s0, %s582_s30  ;;  %s192_s30 = scalar_lea.vmem [#allocation5], %s583_s21 }
  0x20   : > { %s176_s10 = sshll.u32 %s175_s7, 4  ;;  %s199_s29 = scalar_lea.hbm %s1056_s1, %s584_s22  ;;  %s177_s10 = int_to_ptr.hbm [resolvable:$true] %s176_s10 }
  0x21   : > { %598 = dma.hbm_to_vmem [thread:$0]  (!%p939_p0), %s177_s10, 384, %s179_s9, %s165_s11, %s844_s18, %s844_s18, %s845_s19  }
  0x22   : > { %s202_s6 = sshll.u32 %s192_s30, 4  ;;  %s200_s7 = sshll.u32 %s199_s29, 4  ;;  %s203_s6 = int_to_ptr.vmem [resolvable:$true] %s202_s6  ;;  %s201_s7 = int_to_ptr.hbm [resolvable:$true] %s200_s7 }
  0x23   : > { %601 = dma.hbm_to_vmem [thread:$0]  (!%p939_p0), %s201_s7, 1536, %s203_s6, %s189_s8, %s844_s18, %s844_s18, %s845_s19  }
  0x24   : > { %214 = sbr.rel (%p211_p3) target bundleno = 81 (0x51), region = 28  ;;  %s960_s9 = sand.u32 (!%p211_p3), 1, %s826_s13  }
  0x25   : > { %s585_s10 = smul.u32 (!%p211_p3), 24, %s960_s9  ;;  %s217_s11 = scalar_lea.sflag (!%p211_p3), [#allocation3], %s960_s9 }
  0x27   : > { %s220_s0 = scalar_lea.vmem (!%p211_p3), [#allocation2], %s585_s10 }
  0x29   : > { %805 = dma.done.wait (%p915_p8), %s217_s11, 384  }
  0x2a   : > { %807 = vsyncadd (%p915_p8), %s217_s11, 4294966912  ;;  %s586_s28 = smul.u32 96, %s960_s9  ;;  %s227_s4 = scalar_lea.sflag [#allocation6], %s960_s9 }
  0x2c   : > { %s970_s18 = scalar_lea.vmem [#allocation5], %s586_s28 }
  0x2d   : > { %809 = dma.done.wait (%p915_p8), %s227_s4, 1536  }
  0x2e   : > { %811 = vsyncadd (%p915_p8), %s227_s4, 4294965760  ;;  %v278_v0 = vld [vmem:[%s220_s0] sm:$0xff]  ;;  %v279_v1 = vld [vmem:[%s220_s0 + $0x8] sm:$0xff]  ;;  %s579_s24 = sshll.u32 %s834_s15, 5  ;;  %s382_s28 = scalar_lea.sflag [#allocation4], %s960_s9 }
  0x2f   : > { %v280_v2 = vld [vmem:[%s220_s0 + $0x10] sm:$0xff]  ;;  %v281_v3 = vunpack.c.0.s8 %v278_v0  ;;  %v285_v4 = vunpack.c.0.s8 %v279_v1  ;;  %v282_v7 = vunpack.c.1.s8 %v278_v0  ;;  %v286_v10 = vunpack.c.1.s8 %v279_v1  ;;  %v306_v12 = vld [vmem:[%s970_s18 + $0x8] sm:$0xff]  ;;  %v307_v25 = vld [vmem:[%s970_s18 + $0x10] sm:$0xff]  ;;  %s569_s0 = sshll.u32 %s960_s9, 5  ;;  %s398_s22 = scalar_lea.hbm %s1057_s2, %s579_s24 }
  0x30   : > { %v289_v5 = vunpack.c.0.s8 %v280_v2  ;;  %v305_v6 = vld [vmem:[%s970_s18] sm:$0xff]  ;;  %v290_v11 = vunpack.c.1.s8 %v280_v2  ;;  %v283_v13 = vunpack.c.2.s8 %v278_v0  ;;  %v287_v14 = vunpack.c.2.s8 %v279_v1  ;;  %v310_v19 = vld [vmem:[%s970_s18 + $0x28] sm:$0xff]  ;;  %v311_v30 = vld [vmem:[%s970_s18 + $0x30] sm:$0xff]  ;;  %s256_s23 = scalar_lea.vmem [#allocation7], %s569_s0  ;;  %s401_s29 = sshll.u32 %s398_s22, 4  ;;  %s402_s29 = int_to_ptr.hbm [resolvable:$true] %s401_s29 }
  0x31   : > { %v309_v8 = vld [vmem:[%s970_s18 + $0x20] sm:$0xff]  ;;  %v293_v15 = vcvt.s32.f32 %v281_v3  ;;  %v297_v16 = vcvt.s32.f32 %v285_v4  ;;  %v294_v18 = vcvt.s32.f32 %v282_v7  ;;  %v314_v20 = vld [vmem:[%s970_s18 + $0x48] sm:$0xff]  ;;  %v298_v21 = vcvt.s32.f32 %v286_v10  ;;  %v315_v31 = vld [vmem:[%s970_s18 + $0x50] sm:$0xff]  ;;  %s399_s5 = sshll.u32 %s256_s23, 4  ;;  %s1004_s7 = scalar_lea.hbm %s1058_s3, %s579_s24  ;;  %s997_s5 = int_to_ptr.vmem [resolvable:$true] %s399_s5 }
  0x32   : > { %v313_v9 = vld [vmem:[%s970_s18 + $0x40] sm:$0xff]  ;;  %v301_v17 = vcvt.s32.f32 %v289_v5  ;;  %v302_v22 = vcvt.s32.f32 %v290_v11  ;;  %v291_v23 = vunpack.c.2.s8 %v280_v2  ;;  %v295_v24 = vcvt.s32.f32 %v283_v13  ;;  %v308_v44 = vld [vmem:[%s970_s18 + $0x18] sm:$0xff]  ;;  %s263_s8 = scalar_lea.vmem [#allocation8], %s569_s0  ;;  %s418_s11 = sshll.u32 %s1004_s7, 4  ;;  %s419_s11 = int_to_ptr.hbm [resolvable:$true] %s418_s11 }
  0x33   : > { %v317_v26 = vmul.f32 %v305_v6, %v293_v15  ;;  %v321_v27 = vmul.f32 %v309_v8, %v297_v16  ;;  %v318_v29 = vmul.f32 %v306_v12, %v294_v18  ;;  %v322_v32 = vmul.f32 %v310_v19, %v298_v21  ;;  %v312_v45 = vld [vmem:[%s970_s18 + $0x38] sm:$0xff]  ;;  %s416_s10 = sshll.u32 %s263_s8, 4  ;;  %s738_s15 = sshra.s32 %s402_s29, 4  ;;  %s739_s15 = int_to_ptr.hbm [resolvable:$true] %s738_s15  ;;  %s417_s10 = int_to_ptr.vmem [resolvable:$true] %s416_s10 }
  0x34   : > { %v325_v28 = vmul.f32 %v313_v9, %v301_v17  ;;  %v326_v33 = vmul.f32 %v314_v20, %v302_v22  ;;  %v299_v34 = vcvt.s32.f32 %v287_v14  ;;  %v303_v35 = vcvt.s32.f32 %v291_v23  ;;  %v316_v49 = vld [vmem:[%s970_s18 + $0x58] sm:$0xff]  ;;  %s740_s4 = scalar_lea.hbm %s739_s15, 32  ;;  %s744_s19 = scalar_lea.hbm %s1057_s2, 64 }
  0x35   : > { %v345_v36 = vadd.f32 %v321_v27, %v317_v26  ;;  %v319_v37 = vmul.f32 %v307_v25, %v295_v24  ;;  %v284_v38 = vunpack.c.3.s8 %v278_v0  ;;  %v288_v39 = vunpack.c.3.s8 %v279_v1  ;;  %p741_p4 = scmp.ne.s32.totalorder %s739_s15, %s740_s4  ;;  %p745_p7 = scmp.lt.s32.totalorder %s739_s15, %s1057_s2 }
  0x36   : > { %v347_v40 = vadd.f32 %v322_v32, %v318_v29  ;;  %v323_v41 = vmul.f32 %v311_v30, %v299_v34  ;;  %v327_v42 = vmul.f32 %v315_v31, %v303_v35  ;;  %v292_v43 = vunpack.c.3.s8 %v280_v2  ;;  %p746_p8 = scmp.lt.s32.totalorder %s744_s19, %s740_s4 }
  0x37   : > { %v346_v46 = vadd.f32 %v345_v36, %v325_v28  ;;  %v296_v47 = vcvt.s32.f32 %v284_v38  ;;  %v300_v48 = vcvt.s32.f32 %v288_v39  ;;  %v329_v50 = vadd.f32 %v305_v6, %v293_v15  ;;  %p742_p5 = pnand %p741_p4, %p919_p9 }
  0x38   : > { %v348_v51 = vadd.f32 %v347_v40, %v326_v33  ;;  %v349_v52 = vadd.f32 %v323_v41, %v319_v37  ;;  %v304_v53 = vcvt.s32.f32 %v292_v43  ;;  %v333_v54 = vadd.f32 %v309_v8, %v297_v16  ;;  %p747_p10 = por %p746_p8, %p745_p7 }
  0x39   : > { %v320_v55 = vmul.f32 %v308_v44, %v296_v47  ;;  %v324_v56 = vmul.f32 %v312_v45, %v300_v48  ;;  %v337_v57 = vadd.f32 %v313_v9, %v301_v17  ;;  %357 = vst [vmem:[%s256_s23] sm:$0xff] %v346_v46  ;;  %v330_v62 = vadd.f32 %v306_v12, %v294_v18  ;;  %p743_p6 = pneg %p742_p5 }
  0x3a   : > { %v350_v58 = vadd.f32 %v349_v52, %v327_v42  ;;  %v328_v59 = vmul.f32 %v316_v49, %v304_v53  ;;  %v365_v60 = vadd.f32 %v333_v54, %v329_v50  ;;  %v334_v63 = vadd.f32 %v310_v19, %v298_v21  ;;  %358 = vst [vmem:[%s256_s23 + $0x8] sm:$0xff] %v348_v51 }
  0x3b   : > { %v351_v61 = vadd.f32 %v324_v56, %v320_v55  ;;  %v338_v0 = vadd.f32 %v314_v20, %v302_v22  ;;  %v331_v2 = vadd.f32 %v307_v25, %v295_v24  ;;  %v335_v3 = vadd.f32 %v311_v30, %v299_v34  ;;  %p748_p13 = pnand %p747_p10, %p743_p6 }
  0x3c   : > { %v366_v1 = vadd.f32 %v365_v60, %v337_v57  ;;  %v367_v5 = vadd.f32 %v334_v63, %v330_v62  ;;  %v339_v6 = vadd.f32 %v315_v31, %v303_v35  ;;  %v332_v7 = vadd.f32 %v308_v44, %v296_v47  ;;  %359 = vst [vmem:[%s256_s23 + $0x10] sm:$0xff] %v350_v58 }
  0x3d   : > { %v352_v4 = vadd.f32 %v351_v61, %v328_v59  ;;  %v369_v8 = vadd.f32 %v335_v3, %v331_v2  ;;  %v336_v9 = vadd.f32 %v312_v45, %v300_v48  ;;  %v340_v10 = vadd.f32 %v316_v49, %v304_v53 }
  0x3e   : > { %v368_v11 = vadd.f32 %v367_v5, %v338_v0  ;;  %377 = vst [vmem:[%s263_s8] sm:$0xff] %v366_v1 }
  0x3f   : > { %v370_v12 = vadd.f32 %v369_v8, %v339_v6  ;;  %v371_v13 = vadd.f32 %v336_v9, %v332_v7  ;;  %360 = vst [vmem:[%s256_s23 + $0x18] sm:$0xff] %v352_v4 }
  0x41   : > { %v372_v14 = vadd.f32 %v371_v13, %v340_v10 }
  0x42   : > { %751 = shalt.err (!%p748_p13)
}
  0x43   : > { %s846_s22 = smov 128   ;;  %s847_s23 = smov 8   ;;  %378 = vst [vmem:[%s263_s8 + $0x8] sm:$0xff] %v368_v11 }
  0x44   : > { %591 = dma.vmem_to_hbm [thread:$0]  (%p919_p9), %s997_s5, 512, %s402_s29, %s382_s28, %s846_s22, %s846_s22, %s847_s23  }
  0x45   : > { %379 = vst [vmem:[%s263_s8 + $0x10] sm:$0xff] %v370_v12  ;;  %s387_s30 = scalar_lea.sflag [#allocation9], %s960_s9  ;;  %s766_s6 = sshra.s32 %s419_s11, 4  ;;  %s767_s6 = int_to_ptr.hbm [resolvable:$true] %s766_s6 }
  0x46   : > { %380 = vst [vmem:[%s263_s8 + $0x18] sm:$0xff] %v372_v14  ;;  %s768_s7 = scalar_lea.hbm %s767_s6, 32  ;;  %s772_s18 = scalar_lea.hbm %s1058_s3, 64 }
  0x47   : > { %p769_p0 = scmp.ne.s32.totalorder %s767_s6, %s768_s7  ;;  %p773_p3 = scmp.lt.s32.totalorder %s767_s6, %s1058_s3 }
  0x48   : > { %p774_p4 = scmp.lt.s32.totalorder %s772_s18, %s768_s7 }
  0x49   : > { %p770_p1 = pnand %p769_p0, %p919_p9 }
  0x4a   : > { %p775_p5 = por %p774_p4, %p773_p3 }
  0x4b   : > { %p771_p2 = pneg %p770_p1 }
  0x4d   : > { %p776_p6 = pnand %p775_p5, %p771_p2 }
  0x4f   : > { %779 = shalt.err (!%p776_p6)
}
  0x50   : > { %592 = dma.vmem_to_hbm [thread:$0]  (%p919_p9), %s417_s10, 512, %s419_s11, %s387_s30, %s846_s22, %s846_s22, %s847_s23  }
  0x51 PF: > { %s433_s9 = sand.u32 1, %s822_s12   ;;  %p603_p7 = pnand %p565_p12, %p926_p11 }
  0x52   : > { %s434_s5 = scalar_lea.sflag [#allocation4], %s433_s9 }
  0x53   : > { %p604_p8 = pneg %p603_p7 }
  0x55   : > { %813 = dma.done.wait (%p604_p8), %s434_s5, 512  }
  0x56   : > { %815 = vsyncadd (%p604_p8), %s434_s5, 4294966784  ;;  %s444_s29 = scalar_lea.sflag [#allocation9], %s433_s9 }
  0x57   : > { %817 = dma.done.wait (%p604_p8), %s444_s29, 512  }
  0x58   : > { %819 = vsyncadd (%p604_p8), %s444_s29, 4294966784  ;;  %s26_s17 = sadd.s32 1, %s842_s17   ;;  %s1066_s12 = smov %s826_s13 }
  0x59   : > { %p23_p10 = scmp.ge.s32.totalorder %s26_s17, 4   ;;  %s1067_s13 = smov %s830_s14 }
  0x5a   : > { %s1068_s14 = smov %s924_s26  ;;  %s1069_s15 = smov %s838_s16 }
  0x5b   : > { %s1070_s16 = smov %s1072_s20  ;;  %25 = sbr.rel (!%p23_p10) target bundleno = 12 (0xc), region = 107 }
  0x60   :  { %450 = vsyncpa [#allocation3], 1 }
  0x61   :  { %452 = vsyncpa [#allocation3 + $0x1], 1 }
  0x62   :  { %453 = vsyncpa [#allocation6], 1 }
  0x63   :  { %455 = vsyncpa [#allocation6 + $0x1], 1 }
  0x64   :  { %456 = vsyncpa [#allocation4], 1 }
  0x65   :  { %458 = vsyncpa [#allocation4 + $0x1], 1 }
  0x66   :  { %459 = vsyncpa [#allocation9], 1 }
  0x67   :  { %461 = vsyncpa [#allocation9 + $0x1], 1 }

</bundles_post_ra>
